<compile_context>
chip_gen: v7x
topology: tpu7x:2x2x1
jax: 0.10.0
libtpu: 0.0.40
codegen_flags: <defaults>
</compile_context>

<pallas_src>
import jax
import jax.numpy as jnp
from jax.experimental import pallas as pl
from jax.experimental.pallas import tpu as pltpu

_COS_EPS = 1e-8          # torch.nn.CosineSimilarity default eps
_SUBLANE = 8
_LANE = 128
_TM_MAX = 256            # row tile (sublane axis)
_TN_MAX = 256            # col tile (lane axis) — fills 256-wide MXU on v6e/v7x
_RESIDENT_VMEM_BUDGET = 24 << 20   # double-buffered working-set cap for resident-y path


def _round_up(n, m):
    return ((n + m - 1) // m) * m


def _similarity_kernel(x_ref, y_ref, invx_ref, invy_ref, o_ref):
    # x_ref:    (TM, H)  input dtype (bf16 stays bf16 into the MXU)
    # y_ref:    (TN, H)  input dtype
    # invx_ref: (TM, 1)  f32  1 / max(||x_i||, eps)
    # invy_ref: (1, TN)  f32  (1 / max(||y_j||, eps)) / temp  (lane-major: no transpose)
    # o_ref:    (TM, TN) output tile
    dots = jax.lax.dot_general(
        x_ref[...], y_ref[...],
        dimension_numbers=(((1,), (1,)), ((), ())),   # contract last axis of both
        preferred_element_type=jnp.float32,
    )                                                 # (TM, TN) f32 on the MXU
    o_ref[...] = (dots * invx_ref[...] * invy_ref[...]).astype(o_ref.dtype)


def similarity(x, y, temp, change_temp=None, out_dtype=None, tm=None, tn=None):
    """Pallas equivalent of Similarity.forward for SimCSE-style broadcast inputs.

    x: (Bx, 1, H), y: (1, By, H)  ->  (Bx, By) in the promoted input dtype
    (override with out_dtype).  tm/tn override the tile sizes (testing/tuning).
    """
    assert x.ndim == 3 and y.ndim == 3, "expected (Bx,1,H) and (1,By,H)"
    assert x.shape[1] == 1 and y.shape[0] == 1 and x.shape[2] == y.shape[2]
    x2d = jnp.squeeze(x, axis=1)   # (Bx, H)
    y2d = jnp.squeeze(y, axis=0)   # (By, H)
    Bx, H = x2d.shape
    By, _ = y2d.shape
    if out_dtype is None:
        out_dtype = jnp.promote_types(x2d.dtype, y2d.dtype)

    t = temp if change_temp is None else change_temp

    # ---- hoisted per-row inverse norms (computed once, not per output tile) ----
    xf = x2d.astype(jnp.float32)
    yf = y2d.astype(jnp.float32)
    inv_x = jax.lax.rsqrt(
        jnp.maximum(jnp.sum(xf * xf, axis=-1, keepdims=True),
                    _COS_EPS * _COS_EPS))                           # (Bx, 1)
    inv_y = jax.lax.rsqrt(
        jnp.maximum(jnp.sum(yf * yf, axis=-1), _COS_EPS * _COS_EPS))
    inv_y = (inv_y / jnp.asarray(t, jnp.float32))[None, :]          # (1, By), temp folded

    x_bytes = x2d.dtype.itemsize
    y_bytes = y2d.dtype.itemsize

    # ---- tile selection ----
    if tm is not None:
        TM = tm
        Bxp = _round_up(Bx, TM)
    elif Bx <= _TM_MAX:
        TM = _round_up(Bx, _SUBLANE)
        Bxp = TM
    else:
        TM = _TM_MAX
        Bxp = _round_up(Bx, _TM_MAX)

    def _est(tn_):  # double-buffered per-step VMEM footprint estimate
        return 2 * (TM * H * x_bytes + tn_ * H * y_bytes
                    + TM * tn_ * jnp.dtype(out_dtype).itemsize
                    + (TM + tn_) * 4)

    if tn is not None:
        TN = tn
        Byp = _round_up(By, TN)
    else:
        tn_full = _round_up(By, _LANE)
        if tn_full <= _TN_MAX or _est(tn_full) <= _RESIDENT_VMEM_BUDGET:
            # y fully resident: single column tile, y DMA'd from HBM exactly once.
            TN, Byp = tn_full, tn_full
        else:
            TN = _TN_MAX
            Byp = _round_up(By, _TN_MAX)

    # ---- pad to tile multiples (padded rows/cols produce exact zeros) ----
    if Bxp != Bx:
        x2d = jnp.pad(x2d, ((0, Bxp - Bx), (0, 0)))
        inv_x = jnp.pad(inv_x, ((0, Bxp - Bx), (0, 0)))
    if Byp != By:
        y2d = jnp.pad(y2d, ((0, Byp - By), (0, 0)))
        inv_y = jnp.pad(inv_y, ((0, 0), (0, Byp - By)))

    grid = (Bxp // TM, Byp // TN)
    vmem_limit = int(min(64 << 20, max(32 << 20, 2 * _est(TN))))

    out = pl.pallas_call(
        _similarity_kernel,
        out_shape=jax.ShapeDtypeStruct((Bxp, Byp), out_dtype),
        grid_spec=pltpu.PrefetchScalarGridSpec(
            num_scalar_prefetch=0,
            grid=grid,
            in_specs=[
                pl.BlockSpec((TM, H), lambda i, j: (i, 0)),   # x rows (resident over j)
                pl.BlockSpec((TN, H), lambda i, j: (j, 0)),   # y rows
                pl.BlockSpec((TM, 1), lambda i, j: (i, 0)),   # 1/||x||
                pl.BlockSpec((1, TN), lambda i, j: (0, j)),   # 1/(||y||*temp), lane-major
            ],
            out_specs=pl.BlockSpec((TM, TN), lambda i, j: (i, j)),
        ),
        compiler_params=pltpu.CompilerParams(
            dimension_semantics=("parallel", "parallel"),
            vmem_limit_bytes=vmem_limit),
    )(x2d, y2d, inv_x, inv_y)

    return out[:Bx, :By]


def _reference(x, y, temp):
    # Pure-JAX replica of torch CosineSimilarity(dim=-1) with broadcasting.
    xb, yb = jnp.broadcast_arrays(x, y)
    dot = jnp.sum(xb * yb, axis=-1)
    nx = jnp.linalg.norm(xb, axis=-1)
    ny = jnp.linalg.norm(yb, axis=-1)
    return dot / jnp.maximum(nx * ny, _COS_EPS) / temp


if __name__ == "__main__":
    key = jax.random.PRNGKey(0)
    TEMP = 0.05

    # --- small canonical SimCSE shape (single tile) ---
    B, H = 8, 32
    kx, ky, kbig = jax.random.split(key, 3)
    z1 = jax.random.normal(kx, (B, H), dtype=jnp.float32)
    z2 = jax.random.normal(ky, (B, H), dtype=jnp.float32)

    x = z1[:, None, :]   # (B, 1, H)
    y = z2[None, :, :]   # (1, B, H)

    out = jax.block_until_ready(similarity(x, y, TEMP))
    ref = _reference(x, y, TEMP)
    assert out.shape == (B, B)
    assert jnp.allclose(out, ref, atol=1e-4, rtol=1e-4), (
        f"max abs err {jnp.max(jnp.abs(out - ref))}")

    # `change_temp` path (temperature folded into the precomputed inv_y scale).
    out2 = jax.block_until_ready(similarity(x, y, TEMP, change_temp=0.1))
    ref2 = _reference(x, y, 0.1)
    assert jnp.allclose(out2, ref2, atol=1e-4, rtol=1e-4)

    # --- padding path with resident-y (B not a multiple of 128, single col tile) ---
    B2 = 200
    z3 = jax.random.normal(kbig, (B2, H), dtype=jnp.float32)
    x3 = z3[:, None, :]
    y3 = z3[None, :, :]
    out3 = jax.block_until_ready(similarity(x3, y3, TEMP))
    ref3 = _reference(x3, y3, TEMP)
    assert out3.shape == (B2, B2)
    assert jnp.allclose(out3, ref3, atol=1e-4, rtol=1e-4), (
        f"max abs err {jnp.max(jnp.abs(out3 - ref3))}")

    # --- forced multi-tile grid: exercises the streamed-y 2-D grid path ---
    out4 = jax.block_until_ready(similarity(x3, y3, TEMP, tm=128, tn=128))
    assert out4.shape == (B2, B2)
    assert jnp.allclose(out4, ref3, atol=1e-4, rtol=1e-4), (
        f"max abs err {jnp.max(jnp.abs(out4 - ref3))}")

    print("KERNEL_OK")
</pallas_src>

<mosaic_0001>
module attributes {stable_mosaic.version = 11 : i64} {
  func.func @_similarity_kernel(%arg0: i32, %arg1: i32, %arg2: memref<8x32xf32, #tpu.memory_space<vmem>>, %arg3: memref<128x32xf32, #tpu.memory_space<vmem>>, %arg4: memref<8x1xf32, #tpu.memory_space<vmem>>, %arg5: memref<1x128xf32, #tpu.memory_space<vmem>>, %arg6: memref<8x128xf32, #tpu.memory_space<vmem>>) attributes {dimension_semantics = [#tpu.dimension_semantics<parallel>, #tpu.dimension_semantics<parallel>], iteration_bounds = array<i64: 1, 1>, scalar_prefetch = 0 : i64, scratch_operands = 0 : i64, tpu.core_type = #tpu.core_type<tc>, window_params = [{transform_indices = @transform_0, window_bounds = array<i64: 8, 32>}, {transform_indices = @transform_1, window_bounds = array<i64: 128, 32>}, {transform_indices = @transform_2, window_bounds = array<i64: 8, 1>}, {transform_indices = @transform_3, window_bounds = array<i64: 1, 128>}, {transform_indices = @transform_4, window_bounds = array<i64: 8, 128>}]} {
    %c0 = arith.constant 0 : index
    %c0_0 = arith.constant 0 : index
    %0 = vector.load %arg2[%c0, %c0_0] : memref<8x32xf32, #tpu.memory_space<vmem>>, vector<8x32xf32>
    %c0_1 = arith.constant 0 : index
    %c0_2 = arith.constant 0 : index
    %1 = vector.load %arg3[%c0_1, %c0_2] : memref<128x32xf32, #tpu.memory_space<vmem>>, vector<128x32xf32>
    %cst = arith.constant dense<0.000000e+00> : vector<8x128xf32>
    %2 = tpu.matmul %0, %1, %cst {dimension_numbers = #tpu.dot_dimension_numbers<[1], [1], [0], [0], [0, 0, 1, 0], [], []>} : vector<8x32xf32>, vector<128x32xf32>, vector<8x128xf32> -> vector<8x128xf32>
    %c0_3 = arith.constant 0 : index
    %c0_4 = arith.constant 0 : index
    %3 = vector.load %arg4[%c0_3, %c0_4] : memref<8x1xf32, #tpu.memory_space<vmem>>, vector<8x1xf32>
    %4 = vector.broadcast %3 : vector<8x1xf32> to vector<8x128xf32>
    %5 = arith.mulf %2, %4 : vector<8x128xf32>
    %c0_5 = arith.constant 0 : index
    %c0_6 = arith.constant 0 : index
    %6 = vector.load %arg5[%c0_5, %c0_6] : memref<1x128xf32, #tpu.memory_space<vmem>>, vector<1x128xf32>
    %7 = vector.broadcast %6 : vector<1x128xf32> to vector<8x128xf32>
    %8 = arith.mulf %5, %7 : vector<8x128xf32>
    %c0_7 = arith.constant 0 : index
    %c0_8 = arith.constant 0 : index
    %9 = vector.load %arg6[%c0_7, %c0_8] : memref<8x128xf32, #tpu.memory_space<vmem>>, vector<8x128xf32>
    tpu.vector_store %arg6[%c0_7, %c0_8], %8 {strides = array<i32>} : memref<8x128xf32, #tpu.memory_space<vmem>>, vector<8x128xf32>,
    return
  }
  func.func @transform_0(%arg0: i32, %arg1: i32) -> (i32, i32) {
    %c0_i32 = arith.constant 0 : i32
    %c0_i32_0 = arith.constant 0 : i32
    return %arg0, %c0_i32 : i32, i32
  }
  func.func @transform_1(%arg0: i32, %arg1: i32) -> (i32, i32) {
    %c0_i32 = arith.constant 0 : i32
    %c0_i32_0 = arith.constant 0 : i32
    return %arg1, %c0_i32 : i32, i32
  }
  func.func @transform_2(%arg0: i32, %arg1: i32) -> (i32, i32) {
    %c0_i32 = arith.constant 0 : i32
    %c0_i32_0 = arith.constant 0 : i32
    return %arg0, %c0_i32 : i32, i32
  }
  func.func @transform_3(%arg0: i32, %arg1: i32) -> (i32, i32) {
    %c0_i32 = arith.constant 0 : i32
    %c0_i32_0 = arith.constant 0 : i32
    return %c0_i32, %arg1 : i32, i32
  }
  func.func @transform_4(%arg0: i32, %arg1: i32) -> (i32, i32) {
    %c0_i32 = arith.constant 0 : i32
    return %arg0, %arg1 : i32, i32
  }
}

</mosaic_0001>

<bundles_post_ra>
// kernel: tpu_custom_call.1
= control target key start
LH: loop header
LB: loop body
LE: loop exit
PB: predicated region body
PF: predicated region fallthrough
CT: control target
= control target key end

     0   :  { %vm35_vm0 = vcmask 261120   ;;  %v319_v2 = vmov 0.0|0.0   ;;  %vm320_vm2 = vmmov 0   ;;  %v321_v5 = vmov 0.0   ;;  %s441_s0 = inlined_call_operand.vmem [shape: f32[8,32], index: 0, kind: input, shape index: {}]   ;;  %s442_s1 = inlined_call_operand.vmem [shape: f32[128,32], index: 1, kind: input, shape index: {}]   ;;  %s443_s2 = inlined_call_operand.vmem [shape: f32[8,1], index: 2, kind: input, shape index: {}]   ;;  %s444_s3 = inlined_call_operand.vmem [shape: f32[1,128], index: 3, kind: input, shape index: {}]   ;;  %s445_s4 = inlined_call_operand.hbm [shape: f32[8,128], index: 4, kind: output, shape index: {}]  }
   0x1   :  { %v19_v0 = vld [vmem:[%s442_s1] sm:$0xff]  ;;  %v20_v1 = vld [vmem:[%s442_s1 + $0x8] sm:$0xff]  ;;  %257 = vmatprep.subr.bf16.mxu0 %v319_v2  ;;  %vm357_vm1 = vmpackc.low %vm35_vm0, %vm35_vm0  ;;  %254 = vmatprep.mubr.msk.f32.mxu0 %vm320_vm2, %v321_v5  ;;  %v322_v6 = vmov 0  }
   0x2   :  { %v258_v3 = vpack.c.bf16 %v20_v1, %v19_v0  ;;  %294 = vset.pattern.permute.xlu0 %v322_v6  ;;  %v21_v7 = vld [vmem:[%s442_s1 + $0x10] sm:$0xff]  ;;  %v22_v8 = vld [vmem:[%s442_s1 + $0x18] sm:$0xff]  ;;  %v157_v9 = vld [vmem:[%s443_s2] sm:$0xff] }
   0x4   :  { %260 = vmatpush3.bf16.xpose.msk.msra.mxu0 %vm357_vm1, %v258_v3 }
   0x5   :  { %261 = vmatprep.subr.bf16.mxu0 %v319_v2 }
   0x6   :  { %9 = vsyncpa [#allocation3], 0  ;;  %v262_v10 = vpack.c.bf16 %v22_v8, %v21_v7  ;;  %160 = vperm.xlu0 %294, %v157_v9   ;;  %v23_v11 = vld [vmem:[%s442_s1 + $0x20] sm:$0xff]  ;;  %v24_v12 = vld [vmem:[%s442_s1 + $0x28] sm:$0xff]  ;;  %s323_s26 = smov [#allocation2]  }
   0x7   :  { %v266_v13 = vpack.c.bf16 %v24_v12, %v23_v11  ;;  %v25_v14 = vld [vmem:[%s442_s1 + $0x30] sm:$0xff]  ;;  %v26_v15 = vld [vmem:[%s442_s1 + $0x38] sm:$0xff]  ;;  %v27_v17 = vld [vmem:[%s442_s1 + $0x40] sm:$0xff]  ;;  %s179_s27 = sshll.u32 %s323_s26, 4  ;;  %s180_s27 = int_to_ptr.vmem [resolvable:$true] %s179_s27 }
   0x8   :  { %v270_v16 = vpack.c.bf16 %v26_v15, %v25_v14  ;;  %v28_v18 = vld [vmem:[%s442_s1 + $0x48] sm:$0xff]  ;;  %v29_v20 = vld [vmem:[%s442_s1 + $0x50] sm:$0xff]  ;;  %v30_v21 = vld [vmem:[%s442_s1 + $0x58] sm:$0xff]  ;;  %p300_p1 = scmp.lt.s32.totalorder %s180_s27, %s180_s27 }
   0x9   :  { %v274_v19 = vpack.c.bf16 %v28_v18, %v27_v17  ;;  %v278_v22 = vpack.c.bf16 %v30_v21, %v29_v20  ;;  %v31_v23 = vld [vmem:[%s442_s1 + $0x60] sm:$0xff]  ;;  %v32_v24 = vld [vmem:[%s442_s1 + $0x68] sm:$0xff]  ;;  %v33_v26 = vld [vmem:[%s442_s1 + $0x70] sm:$0xff] }
   0xa   :  { %v282_v25 = vpack.c.bf16 %v32_v24, %v31_v23  ;;  %v34_v27 = vld [vmem:[%s442_s1 + $0x78] sm:$0xff]  ;;  %v18_v29 = vld [vmem:[%s441_s0] sm:$0xff]  ;;  %s295_s1 = scalar_lea.vmem %s180_s27, 128 }
   0xb   :  { %v286_v28 = vpack.c.bf16 %v34_v27, %v33_v26  ;;  %v204_v32 = vld [vmem:[%s444_s3] ss:$0 sm:$0xff]  ;;  %p296_p0 = scmp.ne.s32.totalorder %s180_s27, %s295_s1  ;;  %p301_p2 = scmp.lt.s32.totalorder %s295_s1, %s295_s1 }
   0xc   :  { %264 = vmatpush3.bf16.xpose.msk.msra.mxu0 %vm357_vm1, %v262_v10 }
   0xd   :  { %265 = vmatprep.subr.bf16.mxu0 %v319_v2  ;;  %p302_p3 = por %p301_p2, %p300_p1 }
   0xf   :  { %p303_p4 = pnand %p302_p3, %p296_p0 }
  0x14   :  { %268 = vmatpush3.bf16.xpose.msk.msra.mxu0 %vm357_vm1, %v266_v13 }
  0x15   :  { %269 = vmatprep.subr.bf16.mxu0 %v319_v2 }
  0x1c   :  { %272 = vmatpush3.bf16.xpose.msk.msra.mxu0 %vm357_vm1, %v270_v16 }
  0x1d   :  { %273 = vmatprep.subr.bf16.mxu0 %v319_v2 }
  0x24   :  { %276 = vmatpush3.bf16.xpose.msk.msra.mxu0 %vm357_vm1, %v274_v19 }
  0x25   :  { %277 = vmatprep.subr.bf16.mxu0 %v319_v2 }
  0x2c   :  { %280 = vmatpush3.bf16.xpose.msk.msra.mxu0 %vm357_vm1, %v278_v22 }
  0x2d   :  { %281 = vmatprep.subr.bf16.mxu0 %v319_v2 }
  0x34   :  { %284 = vmatpush3.bf16.xpose.msk.msra.mxu0 %vm357_vm1, %v282_v25 }
  0x35   :  { %285 = vmatprep.subr.bf16.mxu0 %v319_v2 }
  0x3c   :  { %288 = vmatpush3.bf16.xpose.msk.msra.mxu0 %vm357_vm1, %v286_v28 }
  0x43   :  { %255 = vmatmul.mubr.msk.f32.vlgmr.msra.gmra.mrb[0].mxu0 %vm35_vm0, %v18_v29 }
  0x85   :  { %v161_v30 = vpop.permute.xlu0 %160 }
 0x116   :  { %v153_v31 = vpop.f32.mrb[0].mxu0 }
 0x117   :  { %v163_v33 = vmul.f32 %v161_v30, %v153_v31  ;;  %v256_v34 = vpop.f32.mrb[1].mxu0 }
 0x119   :  { %v171_v35 = vmul.f32 %v204_v32, %v163_v33 }
 0x11b   :  { %172 = vst [vmem:[#allocation2] sm:$0xff] %v171_v35 }
 0x11c   :  { %306 = shalt.err (!%p303_p4)
}
 0x11d   :  { %s307_s2 = scalar_lea.hbm %s445_s4, 128 }
 0x11e   :  { %p308_p5 = scmp.ne.s32.totalorder %s445_s4, %s307_s2  ;;  %p311_p6 = scmp.lt.u32.totalorder %s307_s2, %s445_s4 }
 0x120   :  { %p313_p7 = pnand %p311_p6, %p308_p5 }
 0x122   :  { %316 = shalt.err (!%p313_p7)
}
 0x123   :  { %182 = dma.vmem_to_hbm [thread:$0]  %s180_s27, 128, %s445_s4, [#allocation3]  }
 0x124   :  { %317 = dma.done.wait [#allocation3], 128  }
 0x125   :  { %318 = vsyncadd [#allocation3], 4294967168 }
 0x126   :  { %186 = vsyncpa [#allocation3], 1 }

</bundles_post_ra>
